<compile_context>
chip_gen: v6e
topology: v6e:2x2x1
jax: 0.10.0
libtpu: 0.0.40
codegen_flags: <defaults>
</compile_context>

<pallas_src>
import jax
import jax.numpy as jnp
from jax.experimental import pallas as pl
from jax.experimental.pallas import tpu as pltpu


# ---------------------------------------------------------------------------
# Budgets (bytes). Sized for the smallest relevant VMEM: v7x has 64 MiB
# physical / 32 MiB default scoped; v5e defaults to a 16 MiB scoped limit
# (raised explicitly below). Resident-path working set stays under ~24 MiB:
#   table (1 copy) + one-hot (<=2 MiB) + 2x output tile + 2x index tile.
_RESIDENT_TABLE_BUDGET = 12 << 20   # whole table resident in VMEM below this
_ONEHOT_BUDGET = 2 << 20            # cap on Nt * V * 4 for the one-hot build
_MAX_ROW_TILE = 512                 # rows per grid step (resident path)
_GATHER_ROW_TILE = 256              # rows per grid step (HBM gather path)
_GATHER_WINDOW = 8                  # in-flight row DMAs (HBM gather path)
_VMEM_LIMIT_BYTES = 32 << 20


def _round_up(x: int, m: int) -> int:
    return -(-x // m) * m


def _pick_row_tile(n: int, max_tile: int):
    """Pick a row tile (multiple of 8) and the padded row count.

    * >= 2 grid steps whenever there are >= 16 rows, so ("parallel",) can use
      both v7x TensorCores;
    * prefer a tile that divides the 8-aligned row count (no padded tail
      rows, no trailing HBM->HBM slice), but never shrink below half the cap
      so per-step overhead stays bounded.
    """
    n8 = _round_up(max(n, 1), 8)
    nt = min(_round_up(max(max_tile, 8), 8), n8)
    if n8 >= 16:
        nt = min(nt, _round_up(-(-n8 // 2), 8))
    best = nt
    t = nt
    while t >= max(8, nt // 2):
        if n8 % t == 0:
            best = t
            break
        t -= 8
    nt = best
    return nt, _round_up(n8, nt)


# ---------------------------------------------------------------------------
# Path A: table resident in VMEM (single copy), gather = one-hot matmul (MXU).
# ---------------------------------------------------------------------------
def _onehot_gather_kernel(idx_ref, w_ref, out_ref):
    # idx_ref: (Nt, 1) int32 row ids for this tile
    # w_ref:   (V, D)  full embedding table, single resident VMEM copy
    # out_ref: (Nt, D) gathered rows (sublane/lane dense -> unmasked vst)
    nt = idx_ref.shape[0]
    v = w_ref.shape[0]
    col = jax.lax.broadcasted_iota(jnp.int32, (nt, v), 1)
    one_hot = (col == idx_ref[...]).astype(w_ref.dtype)          # (Nt, V)
    # Exact f32 row selection on the otherwise idle MXU: one-hot values are
    # exact in bf16 and HIGHEST forces the multi-pass f32 decomposition.
    out_ref[...] = jnp.dot(
        one_hot, w_ref[...],
        preferred_element_type=jnp.float32,
        precision=jax.lax.Precision.HIGHEST,
    ).astype(out_ref.dtype)


def _embedding_resident(idx, weight, n):
    v, d = weight.shape
    itemsize = jnp.dtype(weight.dtype).itemsize

    onehot_cap = max(8, (_ONEHOT_BUDGET // (v * 4)) // 8 * 8)
    nt, n_pad = _pick_row_tile(n, min(_MAX_ROW_TILE, onehot_cap))
    idx_padded = jnp.zeros((n_pad, 1), jnp.int32).at[:n, 0].set(idx)

    # Memory-bound selection, not a real matmul.
    cost = pl.CostEstimate(
        flops=n_pad * d,
        transcendentals=0,
        bytes_accessed=v * d * itemsize + n_pad * 4 + n_pad * d * itemsize,
    )

    out = pl.pallas_call(
        _onehot_gather_kernel,
        out_shape=jax.ShapeDtypeStruct((n_pad, d), weight.dtype),
        grid_spec=pltpu.PrefetchScalarGridSpec(
            num_scalar_prefetch=0,
            grid=(n_pad // nt,),
            in_specs=[
                # Per-tile index column.
                pl.BlockSpec((nt, 1), lambda i: (i, 0)),
                # Memory-space-only spec: ONE copy of the table in VMEM, one
                # DMA at kernel entry, no pipeline double-buffer.
                pl.BlockSpec(memory_space=pltpu.MemorySpace.VMEM),
            ],
            out_specs=pl.BlockSpec((nt, d), lambda i: (i, 0)),
        ),
        compiler_params=pltpu.CompilerParams(
            dimension_semantics=("parallel",),      # >=2 tiles -> 2 TCs on v7x
            vmem_limit_bytes=_VMEM_LIMIT_BYTES,     # v5e default is only 16 MiB
        ),
        cost_estimate=cost,
    )(idx_padded, weight)
    # Slice only when n is not a multiple of 8 (otherwise n_pad == n and the
    # extra HBM->HBM copy is avoided entirely).
    return out if n_pad == n else out[:n]


# ---------------------------------------------------------------------------
# Path B (large tables): table stays in HBM; indices scalar-prefetched into
# SMEM; rows gathered with a windowed, pipelined make_async_copy row gather.
# Moves N rows instead of the whole V*D table.
# ---------------------------------------------------------------------------
def _row_gather_kernel(idx_ref, w_hbm, out_ref, sems):
    # idx_ref: (N_pad,) int32, scalar-prefetched into SMEM
    # w_hbm:   (V, D)  embedding table left in HBM (memory_space=ANY)
    # out_ref: (Nt, D) output tile in VMEM
    # sems:    (_GATHER_WINDOW,) DMA semaphores
    nt = out_ref.shape[0]
    base = pl.program_id(0) * nt
    win = min(_GATHER_WINDOW, nt)

    def _start(r, slot):
        pltpu.make_async_copy(
            w_hbm.at[idx_ref[base + r]], out_ref.at[r], sems.at[slot]
        ).start()

    @pl.loop(0, win)
    def _prime(r):
        _start(r, r)

    @pl.loop(0, nt)
    def _drain(r):
        slot = r % win
        pltpu.make_async_copy(w_hbm.at[0], out_ref.at[r], sems.at[slot]).wait()

        @pl.when(r + win < nt)
        def _():
            _start(r + win, slot)


def _embedding_row_gather(idx, weight, n):
    v, d = weight.shape
    itemsize = jnp.dtype(weight.dtype).itemsize
    nt, n_pad = _pick_row_tile(n, _GATHER_ROW_TILE)
    idx_padded = jnp.zeros((n_pad,), jnp.int32).at[:n].set(idx)

    cost = pl.CostEstimate(
        flops=n_pad * d,
        transcendentals=0,
        bytes_accessed=n_pad * 4 + 2 * n_pad * d * itemsize,
    )

    out = pl.pallas_call(
        _row_gather_kernel,
        out_shape=jax.ShapeDtypeStruct((n_pad, d), weight.dtype),
        grid_spec=pltpu.PrefetchScalarGridSpec(
            num_scalar_prefetch=1,
            grid=(n_pad // nt,),
            in_specs=[pl.BlockSpec(memory_space=pl.ANY)],   # table stays in HBM
            out_specs=pl.BlockSpec((nt, d), lambda i, idx_sref: (i, 0)),
            scratch_shapes=[pltpu.SemaphoreType.DMA((_GATHER_WINDOW,))],
        ),
        compiler_params=pltpu.CompilerParams(
            dimension_semantics=("arbitrary",),
            vmem_limit_bytes=_VMEM_LIMIT_BYTES,
        ),
        cost_estimate=cost,
    )(idx_padded, weight)
    return out if n_pad == n else out[:n]


# ---------------------------------------------------------------------------
# Public wrapper (== SimpleEmbedding.forward).
# ---------------------------------------------------------------------------
def simple_embedding(knowledge, weight):
    """Pallas equivalent of SimpleEmbedding.forward: weight[knowledge.long()]."""
    knowledge = jnp.asarray(knowledge)
    idx = knowledge.astype(jnp.int32).reshape(-1)
    n = int(idx.shape[0])
    v, d = weight.shape

    # PyTorch nn.Embedding raises on OOB ids; clamping keeps the gather
    # in-bounds and deterministic (can mask upstream index bugs).
    idx = jnp.clip(idx, 0, v - 1)

    # NOTE: at tiny sizes (e.g. the shipped 128x128 table, N=16) the lookup is
    # pallas_call launch-overhead bound; call sites may prefer jnp.take or
    # fusing the lookup into the consumer kernel.
    table_bytes = v * d * jnp.dtype(weight.dtype).itemsize
    if table_bytes <= _RESIDENT_TABLE_BUDGET:
        out_flat = _embedding_resident(idx, weight, n)
    else:
        # TODO(synk): a middle path (D-tiled resident table) could beat the row
        # gather when N >> V and the table is only slightly over budget.
        out_flat = _embedding_row_gather(idx, weight, n)

    return out_flat.reshape(knowledge.shape + (d,))


if __name__ == "__main__":
    # config.num_classes -> both num_embeddings and embedding_dim.
    num_classes = 128
    batch, seq = 2, 8

    key = jax.random.PRNGKey(0)
    k_w, k_idx = jax.random.split(key)

    # Deterministic synthetic parameters (nn.Embedding default init ~ N(0, 1)).
    weight = jax.random.normal(k_w, (num_classes, num_classes), dtype=jnp.float32)

    # "knowledge" integer indices.
    knowledge = jax.random.randint(k_idx, (batch, seq), 0, num_classes, dtype=jnp.int32)

    out = simple_embedding(knowledge, weight)
    out = jax.block_until_ready(out)

    # Sanity check against the pure-JAX reference.
    ref = jnp.take(weight, knowledge.reshape(-1), axis=0).reshape(batch, seq, num_classes)
    assert out.shape == (batch, seq, num_classes)
    assert out.dtype == jnp.float32
    assert bool(jnp.allclose(out, ref))

    print("KERNEL_OK")
</pallas_src>

<mosaic_0001>
module attributes {stable_mosaic.version = 11 : i64} {
  func.func @_onehot_gather_kernel(%arg0: i32, %arg1: memref<8x1xi32, #tpu.memory_space<vmem>>, %arg2: memref<128x128xf32, #tpu.memory_space<vmem>>, %arg3: memref<8x128xf32, #tpu.memory_space<vmem>>) attributes {dimension_semantics = [#tpu.dimension_semantics<parallel>], iteration_bounds = array<i64: 2>, scalar_prefetch = 0 : i64, scratch_operands = 0 : i64, tpu.core_type = #tpu.core_type<tc>, window_params = [{transform_indices = @transform_0, window_bounds = array<i64: 8, 1>}, {pipeline_mode = #tpu.pipeline_mode<synchronous>, transform_indices = @transform_1, window_bounds = array<i64: 128, 128>}, {transform_indices = @transform_2, window_bounds = array<i64: 8, 128>}]} {
    %0 = tpu.iota {dimensions = array<i32: 1>} : vector<8x128xi32>
    %c0 = arith.constant 0 : index
    %c0_0 = arith.constant 0 : index
    %1 = vector.load %arg1[%c0, %c0_0] : memref<8x1xi32, #tpu.memory_space<vmem>>, vector<8x1xi32>
    %2 = vector.broadcast %1 : vector<8x1xi32> to vector<8x128xi32>
    %3 = arith.cmpi eq, %0, %2 : vector<8x128xi32>
    %4 = arith.extui %3 : vector<8x128xi1> to vector<8x128xi32>
    %5 = arith.sitofp %4 : vector<8x128xi32> to vector<8x128xf32>
    %c0_1 = arith.constant 0 : index
    %c0_2 = arith.constant 0 : index
    %6 = vector.load %arg2[%c0_1, %c0_2] : memref<128x128xf32, #tpu.memory_space<vmem>>, vector<128x128xf32>
    %cst = arith.constant dense<0.000000e+00> : vector<8x128xf32>
    %7 = tpu.matmul %5, %6, %cst {dimension_numbers = #tpu.dot_dimension_numbers<[1], [0], [0], [1], [0, 0, 1, 1], [], []>, precision = #tpu.contract_precision<fp32>} : vector<8x128xf32>, vector<128x128xf32>, vector<8x128xf32> -> vector<8x128xf32>
    %c0_3 = arith.constant 0 : index
    %c0_4 = arith.constant 0 : index
    %8 = vector.load %arg3[%c0_3, %c0_4] : memref<8x128xf32, #tpu.memory_space<vmem>>, vector<8x128xf32>
    tpu.vector_store %arg3[%c0_3, %c0_4], %7 {strides = array<i32>} : memref<8x128xf32, #tpu.memory_space<vmem>>, vector<8x128xf32>,
    return
  }
  func.func @transform_0(%arg0: i32) -> (i32, i32) {
    %c0_i32 = arith.constant 0 : i32
    %c0_i32_0 = arith.constant 0 : i32
    return %arg0, %c0_i32 : i32, i32
  }
  func.func @transform_1(%arg0: i32) -> (i32, i32) {
    %c0_i32 = arith.constant 0 : i32
    %c0_i32_0 = arith.constant 0 : i32
    %c0_i32_1 = arith.constant 0 : i32
    return %c0_i32, %c0_i32_0 : i32, i32
  }
  func.func @transform_2(%arg0: i32) -> (i32, i32) {
    %c0_i32 = arith.constant 0 : i32
    %c0_i32_0 = arith.constant 0 : i32
    return %arg0, %c0_i32 : i32, i32
  }
}

</mosaic_0001>

<bundles_post_ra>
// kernel: tpu_custom_call.1
= control target key start
LH: loop header
LB: loop body
LE: loop exit
PB: predicated region body
PF: predicated region fallthrough
CT: control target
= control target key end

     0   :  { %7 = vsyncpa [#allocation3], 0  ;;  %s1886_s0 = inlined_call_operand.vmem [shape: s32[16,1], index: 0, kind: input, shape index: {}]   ;;  %s1887_s1 = inlined_call_operand.hbm [shape: f32[128,128], index: 1, kind: input, shape index: {}]   ;;  %s1888_s2 = inlined_call_operand.hbm [shape: f32[16,128], index: 2, kind: output, shape index: {}]  }
   0x1   :  { %8 = vsyncpa [#allocation4], 0 }
   0x2   :  { %10 = vsyncpa [#allocation4 + $0x1], 0  ;;  %s1406_s9 = smov 0   ;;  %s1408_s10 = smov 0  }
   0x3   :  { %s1410_s11 = smov 0   ;;  %s1412_s12 = smov 0  }
   0x4 LB: > { %s1427_s13 = sadd.s32 4294967295, %s1381_s12   ;;  %s906_s14 = sadd.s32 4294967294, %s1381_s12   ;;  %s1381_s12 = sphi %s1412_s12, %s1896_s12   ;;  %s1377_s11 = sphi %s1410_s11, %s1895_s11   ;;  %s1373_s10 = sphi %s1408_s10, %s1894_s10   ;;  %s1369_s9 = sphi %s1406_s9, %s1893_s9  }
   0x5   : > { %s1431_s15 = sadd.s32 1, %s1381_s12   ;;  %s70_s16 = sadd.s32 1, %s1377_s11 }
   0x6   : > { %s67_s17 = ssub.s32 %s1381_s12, %s1431_s15  ;;  %p80_p0 = scmp.ne.s32.totalorder %s1377_s11, %s1373_s10 }
   0x7   : > { %p68_p1 = scmp.eq.s32.totalorder %s67_s17, 0  ;;  %p81_p2 = scmp.eq.s32.totalorder %s1427_s13, 1 }
   0x8   : > { %p86_p3 = scmp.ne.s32.totalorder %s1373_s10, %s1369_s9  ;;  %p87_p4 = scmp.eq.s32.totalorder %s906_s14, 1 }
   0x9   : > { %s1442_s18 = scalar_select %p68_p1, %s1377_s11, %s70_s16  }
   0xa   : > { %p1444_p5 = por %p81_p2, %p80_p0  ;;  %p1448_p6 = por %p87_p4, %p86_p3 }
   0xb   : > { %p907_p7 = scmp.ge.s32.totalorder %s1381_s12, 1  ;;  %p94_p8 = scmp.lt.s32.totalorder %s1381_s12, 3 }
   0xc   : > { %s1890_s20 = scalar_select %p1448_p6, 1, 0 }
   0xd   : > { %p1248_p9 = scmp.eq.s32.totalorder %s1427_s13, 0  ;;  %p1455_p10 = pnand %p907_p7, %p94_p8 }
   0xe   : > { %s1383_s22 = smov [#allocation2]  }
   0xf   : > { %s106_s23 = sshll.u32 %s1383_s22, 4  ;;  %p1240_p11 = pneg %p1455_p10  ;;  %s107_s23 = int_to_ptr.vmem [resolvable:$true] %s106_s23 }
  0x10   : > { %s1302_s24 = scalar_lea.vmem %s107_s23, 2048  ;;  %p1310_p3 = scmp.lt.s32.totalorder %s107_s23, %s107_s23 }
  0x11   : > { %p1241_p12 = pnand %p1248_p9, %p1240_p11  ;;  %p1303_p0 = scmp.ne.s32.totalorder %s107_s23, %s1302_s24 }
  0x12   : > { %p1311_p4 = scmp.lt.s32.totalorder %s1302_s24, %s1302_s24 }
  0x13   : > { %p1293_p13 = pneg %p1241_p12 }
  0x14   : > { %p1312_p6 = por %p1311_p4, %p1310_p3 }
  0x15   : > { %p1305_p1 = pnand %p1303_p0, %p1293_p13 }
  0x17   : > { %p1306_p2 = pneg %p1305_p1 }
  0x19   : > { %p1313_p7 = pnand %p1312_p6, %p1306_p2 }
  0x1b   : > { %1316 = shalt.err (!%p1313_p7)
}
  0x1c   : > { %s1384_s25 = smov 128   ;;  %s1385_s26 = smov 8  }
  0x1d   : > { %1243 = dma.hbm_to_vmem [thread:$0]  (!%p1241_p12), %s1887_s1, 2048, %s107_s23, [#allocation3], %s1384_s25, %s1384_s25, %s1385_s26  }
  0x1e   : > { %129 = sbr.rel (%p1455_p10) target bundleno = 453 (0x1c5), region = 28 }
  0x23   : > { %1360 = dma.done.wait (%p1248_p9), [#allocation3], 2048  }
  0x24   : > { %1362 = vsyncadd (%p1248_p9), [#allocation3], 4294965248  ;;  %p150_p8 = scmp.lt.s32.totalorder %s1427_s13, 1  ;;  %v1386_v0 = vmov 0   ;;  %v1387_v1 = vmov 0.0   ;;  %vm1388_vm0 = vmmov 0  }
  0x25   : > { %1290 = vset.pattern.permute.xlu0 %v1386_v0  ;;  %1059 = vmatprep.subr.mxu1 %v1387_v1  ;;  %v178_v3 = vld [vmem:[#allocation2 + $0x78] sm:$0xff]  ;;  %v177_v4 = vld [vmem:[#allocation2 + $0x70] sm:$0xff]  ;;  %v176_v7 = vld [vmem:[#allocation2 + $0x68] sm:$0xff]  ;;  %s147_s6 = sand.u32 1, %s1373_s10   ;;  %s919_s8 = sshll.u32 %s1427_s13, 7 }
  0x26   : > { %s151_s29 = scalar_select %p150_p8, %s1427_s13, 1  ;;  %1024 = vmatprep.subr.mxu0 %v1387_v1  ;;  %1091 = vmatprep.mubr.msk.f32.mxu1 %vm1388_vm0, %v1387_v1  ;;  %v1483_v5 = vand.u32 4294901760, %v178_v3  ;;  %v1485_v6 = vand.u32 4294901760, %v177_v4  ;;  %v175_v8 = vld [vmem:[#allocation2 + $0x60] sm:$0xff]  ;;  %v174_v9 = vld [vmem:[#allocation2 + $0x58] sm:$0xff]  ;;  %v1487_v10 = vand.u32 4294901760, %v176_v7 }
  0x27   : > { %1056 = vmatprep.mubr.msk.f32.mxu0 %vm1388_vm0, %v1387_v1  ;;  %v1489_v11 = vand.u32 4294901760, %v175_v8  ;;  %v1491_v12 = vand.u32 4294901760, %v174_v9  ;;  %v173_v13 = vld [vmem:[#allocation2 + $0x50] sm:$0xff]  ;;  %v172_v14 = vld [vmem:[#allocation2 + $0x48] sm:$0xff]  ;;  %v171_v15 = vld [vmem:[#allocation2 + $0x40] sm:$0xff]  ;;  %s912_s7 = sshll.u32 %s147_s6, 3  ;;  %s833_s22 = scalar_lea.hbm %s1888_s2, %s919_s8 }
  0x28   : > { %s913_s30 = sshll.u32 %s151_s29, 3  ;;  %v1494_v16 = vsub.f32 %v178_v3, %v1483_v5  ;;  %v1497_v17 = vsub.f32 %v177_v4, %v1485_v6  ;;  %1025 = vmatpush3.msra.mxu0 %v1483_v5  ;;  %v1500_v18 = vand.u32 4294901760, %v173_v13  ;;  %v1502_v19 = vand.u32 4294901760, %v172_v14  ;;  %v170_v36 = vld [vmem:[#allocation2 + $0x38] sm:$0xff]  ;;  %v169_v37 = vld [vmem:[#allocation2 + $0x30] sm:$0xff]  ;;  %v168_v41 = vld [vmem:[#allocation2 + $0x28] sm:$0xff] }
  0x29   : > { %s153_s5 = scalar_lea.vmem %s1886_s0, %s913_s30  ;;  %v1505_v20 = vsub.f32 %v176_v7, %v1487_v10  ;;  %v1508_v21 = vsub.f32 %v175_v8, %v1489_v11  ;;  %v1511_v22 = vsub.f32 %v174_v9, %v1491_v12  ;;  %1026 = vmatprep.subr.mxu0 %v1387_v1  ;;  %v1514_v23 = vand.u32 4294901760, %v171_v15  ;;  %v167_v43 = vld [vmem:[#allocation2 + $0x20] sm:$0xff]  ;;  %v166_v51 = vld [vmem:[#allocation2 + $0x18] sm:$0xff]  ;;  %v165_v57 = vld [vmem:[#allocation2 + $0x10] sm:$0xff]  ;;  %s149_s14 = scalar_lea.vmem [#allocation5], %s912_s7 }
  0x2a   : > { %v156_v2 = vld [vmem:[%s153_s5] sm:$0xff]  ;;  %v273_v24 = vand.u32 4294901760, %v1494_v16  ;;  %v280_v25 = vand.u32 4294901760, %v1497_v17  ;;  %v1519_v26 = vsub.f32 %v173_v13, %v1500_v18  ;;  %1027 = vmatpush3.msra.mxu0 %v1485_v6  ;;  %v1526_v29 = vsub.f32 %v172_v14, %v1502_v19  ;;  %v164_v63 = vld [vmem:[#allocation2 + $0x8] sm:$0xff]  ;;  %s835_s16 = sshll.u32 %s149_s14, 4  ;;  %s822_s23 = scalar_lea.sflag [#allocation4], %s147_s6  ;;  %s836_s16 = int_to_ptr.vmem [resolvable:$true] %s835_s16 }
  0x2b   : > { %158 = vperm.xlu0 %1290, %v156_v2   ;;  %v287_v27 = vand.u32 4294901760, %v1505_v20  ;;  %v294_v28 = vand.u32 4294901760, %v1508_v21  ;;  %1028 = vmatprep.subr.mxu0 %v1387_v1  ;;  %v301_v32 = vand.u32 4294901760, %v1511_v22  ;;  %v1542_v35 = vsub.f32 %v171_v15, %v1514_v23  ;;  %v163_v8 = vld [vmem:[#allocation2] sm:$0xff]  ;;  %s1317_s24 = scalar_lea.vmem %s836_s16, 128  ;;  %s1390_s25 = smov [#allocation5]  }
  0x2c   : > { %v274_v30 = vsub.f32 %v1494_v16, %v273_v24  ;;  %v281_v31 = vsub.f32 %v1497_v17, %v280_v25  ;;  %1029 = vmatpush3.msra.mxu0 %v1487_v10  ;;  %v308_v34 = vand.u32 4294901760, %v1519_v26  ;;  %v315_v42 = vand.u32 4294901760, %v1526_v29  ;;  %p1318_p6 = scmp.ne.s32.totalorder %s836_s16, %s1317_s24  ;;  %s1321_s26 = sshll.u32 %s1390_s25, 4  ;;  %s1322_s26 = int_to_ptr.vmem [resolvable:$false] %s1321_s26 }
  0x2d   : > { %v288_v33 = vsub.f32 %v1505_v20, %v287_v27  ;;  %1030 = vmatprep.subr.mxu0 %v1387_v1  ;;  %v295_v40 = vsub.f32 %v1508_v21, %v294_v28  ;;  %v302_v45 = vsub.f32 %v1511_v22, %v301_v32  ;;  %v1553_v46 = vand.u32 4294901760, %v170_v36  ;;  %s1323_s13 = scalar_lea.vmem %s1322_s26, 256  ;;  %p1324_p11 = scmp.lt.s32.totalorder %s836_s16, %s1322_s26 }
  0x2e   : > { %v275_v38 = vand.u32 4294901760, %v274_v30  ;;  %v282_v39 = vand.u32 4294901760, %v281_v31  ;;  %1031 = vmatpush3.msra.mxu0 %v1489_v11  ;;  %v1556_v47 = vand.u32 4294901760, %v169_v37  ;;  %v309_v48 = vsub.f32 %v1519_v26, %v308_v34  ;;  %p1319_p9 = pnand %p1318_p6, %p1444_p5  ;;  %p1325_p12 = scmp.lt.s32.totalorder %s1323_s13, %s1317_s24 }
  0x2f   : > { %1032 = vmatprep.subr.mxu0 %v1387_v1  ;;  %v289_v44 = vand.u32 4294901760, %v288_v33  ;;  %v322_v49 = vand.u32 4294901760, %v1542_v35  ;;  %v1564_v50 = vand.u32 4294901760, %v168_v41  ;;  %v296_v52 = vand.u32 4294901760, %v295_v40 }
  0x30   : > { %1060 = vmatpush3.msra.mxu1 %v275_v38  ;;  %1033 = vmatpush3.msra.mxu0 %v1491_v12  ;;  %v1567_v53 = vsub.f32 %v170_v36, %v1553_v46  ;;  %v1570_v54 = vsub.f32 %v169_v37, %v1556_v47  ;;  %v1573_v55 = vand.u32 4294901760, %v167_v43  ;;  %v316_v56 = vsub.f32 %v1526_v29, %v315_v42  ;;  %p1320_p10 = pneg %p1319_p9  ;;  %p1326_p13 = por %p1325_p12, %p1324_p11 }
  0x31   : > { %1061 = vmatprep.subr.mxu1 %v1387_v1  ;;  %1034 = vmatprep.subr.mxu0 %v1387_v1  ;;  %v303_v58 = vand.u32 4294901760, %v302_v45  ;;  %v1582_v60 = vsub.f32 %v168_v41, %v1564_v50  ;;  %v1585_v61 = vand.u32 4294901760, %v166_v51  ;;  %v323_v62 = vsub.f32 %v1542_v35, %v322_v49 }
  0x32   : > { %1062 = vmatpush3.msra.mxu1 %v282_v39  ;;  %1035 = vmatpush3.msra.mxu0 %v1500_v18  ;;  %v329_v59 = vand.u32 4294901760, %v1567_v53  ;;  %v310_v0 = vand.u32 4294901760, %v309_v48  ;;  %v336_v2 = vand.u32 4294901760, %v1570_v54  ;;  %v1594_v3 = vsub.f32 %v167_v43, %v1573_v55  ;;  %p1327_p0 = pnand %p1326_p13, %p1320_p10 }
  0x33   : > { %1063 = vmatprep.subr.mxu1 %v1387_v1  ;;  %1036 = vmatprep.subr.mxu0 %v1387_v1  ;;  %v1597_v4 = vand.u32 4294901760, %v165_v57  ;;  %v317_v7 = vand.u32 4294901760, %v316_v56  ;;  %v343_v13 = vand.u32 4294901760, %v1582_v60  ;;  %v1606_v14 = vsub.f32 %v166_v51, %v1585_v61 }
  0x34   : > { %1064 = vmatpush3.msra.mxu1 %v289_v44  ;;  %1037 = vmatpush3.msra.mxu0 %v1502_v19  ;;  %v330_v9 = vsub.f32 %v1567_v53, %v329_v59  ;;  %v1609_v15 = vand.u32 4294901760, %v164_v63  ;;  %v324_v30 = vand.u32 4294901760, %v323_v62  ;;  %v337_v31 = vsub.f32 %v1570_v54, %v336_v2 }
  0x35   : > { %1065 = vmatprep.subr.mxu1 %v1387_v1  ;;  %1038 = vmatprep.subr.mxu0 %v1387_v1  ;;  %v350_v33 = vand.u32 4294901760, %v1594_v3  ;;  %v1618_v36 = vsub.f32 %v165_v57, %v1597_v4  ;;  %v1621_v37 = vand.u32 4294901760, %v163_v8  ;;  %v344_v39 = vsub.f32 %v1582_v60, %v343_v13 }
  0x36   : > { %1066 = vmatpush3.msra.mxu1 %v296_v52  ;;  %1039 = vmatpush3.msra.mxu0 %v1514_v23  ;;  %v331_v38 = vand.u32 4294901760, %v330_v9  ;;  %v357_v40 = vand.u32 4294901760, %v1606_v14  ;;  %v1630_v41 = vsub.f32 %v164_v63, %v1609_v15  ;;  %v338_v43 = vand.u32 4294901760, %v337_v31 }
  0x37   : > { %1067 = vmatprep.subr.mxu1 %v1387_v1  ;;  %1040 = vmatprep.subr.mxu0 %v1387_v1  ;;  %v351_v44 = vsub.f32 %v1594_v3, %v350_v33  ;;  %v364_v45 = vand.u32 4294901760, %v1618_v36  ;;  %v1640_v48 = vsub.f32 %v163_v8, %v1621_v37  ;;  %v345_v51 = vand.u32 4294901760, %v344_v39 }
  0x38   : > { %1068 = vmatpush3.msra.mxu1 %v303_v58  ;;  %1041 = vmatpush3.msra.mxu0 %v1553_v46  ;;  %v358_v52 = vsub.f32 %v1606_v14, %v357_v40  ;;  %v371_v56 = vand.u32 4294901760, %v1630_v41  ;;  %v154_v31 = vlaneseq }
  0x39   : > { %1069 = vmatprep.subr.mxu1 %v1387_v1  ;;  %1042 = vmatprep.subr.mxu0 %v1387_v1  ;;  %v352_v57 = vand.u32 4294901760, %v351_v44  ;;  %v365_v58 = vsub.f32 %v1618_v36, %v364_v45  ;;  %v378_v62 = vand.u32 4294901760, %v1640_v48  ;;  %v1389_v44 = vmov 1.0  }
  0x3a   : > { %1070 = vmatpush3.msra.mxu1 %v310_v0  ;;  %1043 = vmatpush3.msra.mxu0 %v1556_v47  ;;  %v359_v63 = vand.u32 4294901760, %v358_v52  ;;  %v372_v0 = vsub.f32 %v1630_v41, %v371_v56 }
  0x3b   : > { %1071 = vmatprep.subr.mxu1 %v1387_v1  ;;  %1044 = vmatprep.subr.mxu0 %v1387_v1  ;;  %v379_v8 = vsub.f32 %v1640_v48, %v378_v62 }
  0x3c   : > { %1072 = vmatpush3.msra.mxu1 %v317_v7  ;;  %1045 = vmatpush3.msra.mxu0 %v1564_v50  ;;  %v366_v7 = vand.u32 4294901760, %v365_v58  ;;  %v373_v9 = vand.u32 4294901760, %v372_v0 }
  0x3d   : > { %1073 = vmatprep.subr.mxu1 %v1387_v1  ;;  %1046 = vmatprep.subr.mxu0 %v1387_v1 }
  0x3e   : > { %1074 = vmatpush3.msra.mxu1 %v324_v30  ;;  %1047 = vmatpush3.msra.mxu0 %v1573_v55  ;;  %v380_v30 = vand.u32 4294901760, %v379_v8 }
  0x3f   : > { %1075 = vmatprep.subr.mxu1 %v1387_v1  ;;  %1048 = vmatprep.subr.mxu0 %v1387_v1 }
  0x40   : > { %1076 = vmatpush3.msra.mxu1 %v331_v38  ;;  %1049 = vmatpush3.msra.mxu0 %v1585_v61  ;;  %v1675_v38 = vand.u32 127, %v154_v31 }
  0x41   : > { %1077 = vmatprep.subr.mxu1 %v1387_v1  ;;  %1050 = vmatprep.subr.mxu0 %v1387_v1 }
  0x42   : > { %1078 = vmatpush3.msra.mxu1 %v338_v43  ;;  %1051 = vmatpush3.msra.mxu0 %v1597_v4 }
  0x43   : > { %1079 = vmatprep.subr.mxu1 %v1387_v1  ;;  %1052 = vmatprep.subr.mxu0 %v1387_v1 }
  0x44   : > { %1080 = vmatpush3.msra.mxu1 %v345_v51  ;;  %1053 = vmatpush3.msra.mxu0 %v1609_v15 }
  0x45   : > { %1081 = vmatprep.subr.mxu1 %v1387_v1  ;;  %1054 = vmatprep.subr.mxu0 %v1387_v1 }
  0x46   : > { %1082 = vmatpush3.msra.mxu1 %v352_v57  ;;  %1055 = vmatpush3.msra.mxu0 %v1621_v37 }
  0x47   : > { %1083 = vmatprep.subr.mxu1 %v1387_v1  ;;  %1094 = vmatprep.subr.mxu0 %v1387_v1 }
  0x48   : > { %1084 = vmatpush3.msra.mxu1 %v359_v63 }
  0x49   : > { %1085 = vmatprep.subr.mxu1 %v1387_v1 }
  0x4a   : > { %1086 = vmatpush3.msra.mxu1 %v366_v7 }
  0x4b   : > { %1087 = vmatprep.subr.mxu1 %v1387_v1 }
  0x4c   : > { %1088 = vmatpush3.msra.mxu1 %v373_v9 }
  0x4d   : > { %1089 = vmatprep.subr.mxu1 %v1387_v1 }
  0x4e   : > { %1090 = vmatpush3.msra.mxu1 %v380_v30 }
  0x4f   : > { %1129 = vmatprep.subr.mxu1 %v1387_v1 }
  0xa6   : > { %v1677_v39 = vpop.permute.xlu0 %158 }
  0xa7   : > { %vm160_vm1 = vcmp.eq.s32.totalorder %v1675_v38, %v1677_v39 }
  0xa8   : > { %v914_v43 = vsel %vm160_vm1, 1.0, %v1387_v1  ;;  %1092 = vmatmul.mubr.msk.f32.vlgmr.msra.gmra.mxu1 %vm160_vm1, %v1389_v44 }
  0xa9   : > { %v1689_v51 = vsub.f32 %v914_v43, %v914_v43  ;;  %1130 = vmatpush3.msra.mxu1 %v1483_v5  ;;  %1161 = vmatprep.mubr.msk.f32.mxu1 %vm1388_vm0, %v1387_v1 }
  0xaa   : > { %1131 = vmatprep.subr.mxu1 %v1387_v1 }
  0xab   : > { %1132 = vmatpush3.msra.mxu1 %v1485_v6  ;;  %v262_v52 = vand.u32 4294901760, %v1689_v51 }
  0xac   : > { %1133 = vmatprep.subr.mxu1 %v1387_v1 }
  0xad   : > { %1134 = vmatpush3.msra.mxu1 %v1487_v10  ;;  %v263_v57 = vsub.f32 %v1689_v51, %v262_v52 }
  0xae   : > { %1135 = vmatprep.subr.mxu1 %v1387_v1 }
  0xaf   : > { %1136 = vmatpush3.msra.mxu1 %v1489_v11  ;;  %v264_v58 = vand.u32 4294901760, %v263_v57 }
  0xb0   : > { %1137 = vmatprep.subr.mxu1 %v1387_v1 }
  0xb1   : > { %1138 = vmatpush3.msra.mxu1 %v1491_v12  ;;  %1057 = vmatmul.mubr.f32.vlgmr.msra.gmra.mxu0 %v264_v58 }
  0xb2   : > { %1095 = vmatpush3.msra.mxu0 %v1494_v16  ;;  %1139 = vmatprep.subr.mxu1 %v1387_v1 }
  0xb3   : > { %1096 = vmatprep.subr.mxu0 %v1387_v1  ;;  %1140 = vmatpush3.msra.mxu1 %v1500_v18 }
  0xb4   : > { %1097 = vmatpush3.msra.mxu0 %v1497_v17  ;;  %1141 = vmatprep.subr.mxu1 %v1387_v1 }
  0xb5   : > { %1098 = vmatprep.subr.mxu0 %v1387_v1  ;;  %1142 = vmatpush3.msra.mxu1 %v1502_v19 }
  0xb6   : > { %1099 = vmatpush3.msra.mxu0 %v1505_v20  ;;  %1143 = vmatprep.subr.mxu1 %v1387_v1 }
  0xb7   : > { %1100 = vmatprep.subr.mxu0 %v1387_v1  ;;  %1144 = vmatpush3.msra.mxu1 %v1514_v23 }
  0xb8   : > { %1101 = vmatpush3.msra.mxu0 %v1508_v21  ;;  %1145 = vmatprep.subr.mxu1 %v1387_v1 }
  0xb9   : > { %1102 = vmatprep.subr.mxu0 %v1387_v1  ;;  %1146 = vmatpush3.msra.mxu1 %v1553_v46 }
  0xba   : > { %1103 = vmatpush3.msra.mxu0 %v1511_v22  ;;  %1147 = vmatprep.subr.mxu1 %v1387_v1 }
  0xbb   : > { %1104 = vmatprep.subr.mxu0 %v1387_v1  ;;  %1148 = vmatpush3.msra.mxu1 %v1556_v47 }
  0xbc   : > { %1105 = vmatpush3.msra.mxu0 %v1519_v26  ;;  %1149 = vmatprep.subr.mxu1 %v1387_v1 }
  0xbd   : > { %1106 = vmatprep.subr.mxu0 %v1387_v1  ;;  %1150 = vmatpush3.msra.mxu1 %v1564_v50 }
  0xbe   : > { %1107 = vmatpush3.msra.mxu0 %v1526_v29  ;;  %1151 = vmatprep.subr.mxu1 %v1387_v1 }
  0xbf   : > { %1108 = vmatprep.subr.mxu0 %v1387_v1  ;;  %1152 = vmatpush3.msra.mxu1 %v1573_v55 }
  0xc0   : > { %1109 = vmatpush3.msra.mxu0 %v1542_v35  ;;  %1153 = vmatprep.subr.mxu1 %v1387_v1 }
  0xc1   : > { %1110 = vmatprep.subr.mxu0 %v1387_v1  ;;  %1154 = vmatpush3.msra.mxu1 %v1585_v61 }
  0xc2   : > { %1111 = vmatpush3.msra.mxu0 %v1567_v53  ;;  %1155 = vmatprep.subr.mxu1 %v1387_v1 }
  0xc3   : > { %1112 = vmatprep.subr.mxu0 %v1387_v1  ;;  %1156 = vmatpush3.msra.mxu1 %v1597_v4 }
  0xc4   : > { %1113 = vmatpush3.msra.mxu0 %v1570_v54  ;;  %1157 = vmatprep.subr.mxu1 %v1387_v1 }
  0xc5   : > { %1114 = vmatprep.subr.mxu0 %v1387_v1  ;;  %1158 = vmatpush3.msra.mxu1 %v1609_v15 }
  0xc6   : > { %1115 = vmatpush3.msra.mxu0 %v1582_v60  ;;  %1159 = vmatprep.subr.mxu1 %v1387_v1 }
  0xc7   : > { %1116 = vmatprep.subr.mxu0 %v1387_v1  ;;  %1160 = vmatpush3.msra.mxu1 %v1621_v37 }
  0xc8   : > { %1117 = vmatpush3.msra.mxu0 %v1594_v3  ;;  %1162 = vmatmul.mubr.f32.vlgmr.msra.gmra.mxu1 %v262_v52 }
  0xc9   : > { %1199 = vmatprep.subr.mxu1 %v1387_v1  ;;  %1118 = vmatprep.subr.mxu0 %v1387_v1 }
  0xca   : > { %1200 = vmatpush3.msra.mxu1 %v1483_v5  ;;  %1119 = vmatpush3.msra.mxu0 %v1606_v14 }
  0xcb   : > { %1201 = vmatprep.subr.mxu1 %v1387_v1  ;;  %1120 = vmatprep.subr.mxu0 %v1387_v1 }
  0xcc   : > { %1202 = vmatpush3.msra.mxu1 %v1485_v6  ;;  %1121 = vmatpush3.msra.mxu0 %v1618_v36 }
  0xcd   : > { %1203 = vmatprep.subr.mxu1 %v1387_v1  ;;  %1122 = vmatprep.subr.mxu0 %v1387_v1 }
  0xce   : > { %1204 = vmatpush3.msra.mxu1 %v1487_v10  ;;  %1123 = vmatpush3.msra.mxu0 %v1630_v41 }
  0xcf   : > { %1205 = vmatprep.subr.mxu1 %v1387_v1  ;;  %1124 = vmatprep.subr.mxu0 %v1387_v1 }
  0xd0   : > { %1206 = vmatpush3.msra.mxu1 %v1489_v11  ;;  %1125 = vmatpush3.msra.mxu0 %v1640_v48 }
  0xd1   : > { %1126 = vmatprep.mubr.msk.f32.mxu0 %vm1388_vm0, %v1387_v1  ;;  %1207 = vmatprep.subr.mxu1 %v1387_v1 }
  0xd2   : > { %1127 = vmatmul.mubr.f32.vlgmr.msra.gmra.mxu0 %v1689_v51  ;;  %1164 = vmatprep.subr.mxu0 %v1387_v1 }
  0xd3   : > { %1208 = vmatpush3.msra.mxu1 %v1491_v12  ;;  %1165 = vmatpush3.msra.mxu0 %v273_v24 }
  0xd4   : > { %1209 = vmatprep.subr.mxu1 %v1387_v1  ;;  %1166 = vmatprep.subr.mxu0 %v1387_v1 }
  0xd5   : > { %1210 = vmatpush3.msra.mxu1 %v1500_v18  ;;  %1167 = vmatpush3.msra.mxu0 %v280_v25 }
  0xd6   : > { %1211 = vmatprep.subr.mxu1 %v1387_v1  ;;  %1168 = vmatprep.subr.mxu0 %v1387_v1 }
  0xd7   : > { %1212 = vmatpush3.msra.mxu1 %v1502_v19  ;;  %1169 = vmatpush3.msra.mxu0 %v287_v27 }
  0xd8   : > { %1213 = vmatprep.subr.mxu1 %v1387_v1  ;;  %1170 = vmatprep.subr.mxu0 %v1387_v1 }
  0xd9   : > { %1214 = vmatpush3.msra.mxu1 %v1514_v23  ;;  %1171 = vmatpush3.msra.mxu0 %v294_v28 }
  0xda   : > { %1215 = vmatprep.subr.mxu1 %v1387_v1  ;;  %1172 = vmatprep.subr.mxu0 %v1387_v1 }
  0xdb   : > { %1216 = vmatpush3.msra.mxu1 %v1553_v46  ;;  %1173 = vmatpush3.msra.mxu0 %v301_v32 }
  0xdc   : > { %1217 = vmatprep.subr.mxu1 %v1387_v1  ;;  %1174 = vmatprep.subr.mxu0 %v1387_v1 }
  0xdd   : > { %1218 = vmatpush3.msra.mxu1 %v1556_v47  ;;  %1175 = vmatpush3.msra.mxu0 %v308_v34 }
  0xde   : > { %1219 = vmatprep.subr.mxu1 %v1387_v1  ;;  %1176 = vmatprep.subr.mxu0 %v1387_v1 }
  0xdf   : > { %1220 = vmatpush3.msra.mxu1 %v1564_v50  ;;  %1177 = vmatpush3.msra.mxu0 %v315_v42 }
  0xe0   : > { %1221 = vmatprep.subr.mxu1 %v1387_v1  ;;  %1178 = vmatprep.subr.mxu0 %v1387_v1 }
  0xe1   : > { %1222 = vmatpush3.msra.mxu1 %v1573_v55  ;;  %1179 = vmatpush3.msra.mxu0 %v322_v49 }
  0xe2   : > { %1223 = vmatprep.subr.mxu1 %v1387_v1  ;;  %1180 = vmatprep.subr.mxu0 %v1387_v1 }
  0xe3   : > { %1224 = vmatpush3.msra.mxu1 %v1585_v61  ;;  %1181 = vmatpush3.msra.mxu0 %v329_v59 }
  0xe4   : > { %1225 = vmatprep.subr.mxu1 %v1387_v1  ;;  %1182 = vmatprep.subr.mxu0 %v1387_v1 }
  0xe5   : > { %1226 = vmatpush3.msra.mxu1 %v1597_v4  ;;  %1183 = vmatpush3.msra.mxu0 %v336_v2 }
  0xe6   : > { %1227 = vmatprep.subr.mxu1 %v1387_v1  ;;  %1184 = vmatprep.subr.mxu0 %v1387_v1 }
  0xe7   : > { %1228 = vmatpush3.msra.mxu1 %v1609_v15  ;;  %1185 = vmatpush3.msra.mxu0 %v343_v13 }
  0xe8   : > { %1229 = vmatprep.subr.mxu1 %v1387_v1  ;;  %1186 = vmatprep.subr.mxu0 %v1387_v1 }
  0xe9   : > { %1230 = vmatpush3.msra.mxu1 %v1621_v37  ;;  %1231 = vmatprep.mubr.msk.f32.mxu1 %vm1388_vm0, %v1387_v1 }
  0xea   : > { %1187 = vmatpush3.msra.mxu0 %v350_v33  ;;  %1232 = vmatmul.mubr.msk.f32.vlgmr.msra.gmra.mxu1 %vm160_vm1, %v1389_v44 }
  0xeb   : > { %1188 = vmatprep.subr.mxu0 %v1387_v1  ;;  %1196 = vmatprep.mubr.msk.f32.mxu0 %vm1388_vm0, %v1387_v1 }
  0xec   : > { %1189 = vmatpush3.msra.mxu0 %v357_v40 }
  0xed   : > { %1190 = vmatprep.subr.mxu0 %v1387_v1 }
  0xee   : > { %1191 = vmatpush3.msra.mxu0 %v364_v45 }
  0xef   : > { %1192 = vmatprep.subr.mxu0 %v1387_v1 }
  0xf0   : > { %1193 = vmatpush3.msra.mxu0 %v371_v56 }
  0xf1   : > { %1194 = vmatprep.subr.mxu0 %v1387_v1 }
  0xf2   : > { %1195 = vmatpush3.msra.mxu0 %v378_v62 }
  0xf3   : > { %1197 = vmatmul.mubr.msk.f32.vlgmr.msra.gmra.mxu0 %vm160_vm1, %v1389_v44 }
 0x168   : > { %v417_v5 = vpop.f32.mrf.mxu1 }
 0x16a   : > { %v1093_v6 = vpop.f32.mrf.mxu1 }
 0x171   : > { %v266_v10 = vpop.f32.mrf.mxu0 }
 0x172   : > { %v418_v1 = vadd.f32 %v417_v5, %v266_v10 }
 0x173   : > { %v1058_v11 = vpop.f32.mrf.mxu0 }
 0x188   : > { %v610_v12 = vpop.f32.mrf.mxu1 }
 0x18a   : > { %v1163_v16 = vpop.f32.mrf.mxu1 }
 0x192   : > { %v521_v17 = vpop.f32.mrf.mxu0 }
 0x193   : > { %v522_v21 = vadd.f32 %v521_v17, %v418_v1 }
 0x194   : > { %v1128_v18 = vpop.f32.mrf.mxu0 }
 0x195   : > { %v611_v22 = vadd.f32 %v610_v12, %v522_v21 }
 0x1aa   : > { %v816_v19 = vpop.f32.mrf.mxu1 }
 0x1ac   : > { %v1233_v20 = vpop.f32.mrf.mxu1 }
 0x1b3   : > { %v729_v23 = vpop.f32.mrf.mxu0 }
 0x1b4   : > { %v730_v24 = vadd.f32 %v729_v23, %v611_v22 }
 0x1b5   : > { %v1198_v25 = vpop.f32.mrf.mxu0 }
 0x1b6   : > { %v817_v26 = vadd.f32 %v816_v19, %v730_v24 }
 0x1b8   : > { %820 = vst [vmem:[%s149_s14] sm:$0xff] %v817_v26 }
 0x1b9   : > { %1330 = shalt.err (!%p1327_p0)
}
 0x1ba   : > { %s1331_s27 = scalar_lea.hbm %s833_s22, 128  ;;  %s1335_s30 = scalar_lea.hbm %s1888_s2, 256 }
 0x1bb   : > { %p1332_p1 = scmp.ne.s32.totalorder %s833_s22, %s1331_s27  ;;  %p1336_p4 = scmp.lt.s32.totalorder %s833_s22, %s1888_s2 }
 0x1bc   : > { %p1337_p7 = scmp.lt.s32.totalorder %s1335_s30, %s1331_s27 }
 0x1bd   : > { %p1333_p2 = pnand %p1332_p1, %p1444_p5 }
 0x1be   : > { %p1338_p8 = por %p1337_p7, %p1336_p4 }
 0x1bf   : > { %p1334_p3 = pneg %p1333_p2 }
 0x1c1   : > { %p1339_p6 = pnand %p1338_p8, %p1334_p3 }
 0x1c3   : > { %1342 = shalt.err (!%p1339_p6)
}
 0x1c4   : > { %1238 = dma.vmem_to_hbm [thread:$0]  (%p1444_p5), %s836_s16, 128, %s833_s22, %s822_s23  }
 0x1c5 PF: > { %p1250_p9 = scmp.ge.s32.totalorder %s1381_s12, 2  ;;  %s847_s5 = sand.u32 1, %s1369_s9  }
 0x1c6   : > { %p1892_p10 = scmp.ne.s32.totalorder %s1890_s20, 0  ;;  %s848_s6 = scalar_lea.sflag [#allocation4], %s847_s5 }
 0x1c8   : > { %p1245_p11 = pnand %p1250_p9, %p1892_p10 }
 0x1ca   : > { %p1246_p12 = pneg %p1245_p11 }
 0x1cc   : > { %1364 = dma.done.wait (%p1246_p12), %s848_s6, 128  }
 0x1cd   : > { %1366 = vsyncadd (%p1246_p12), %s848_s6, 4294967168  ;;  %p13_p13 = scmp.ge.s32.totalorder %s1431_s15, 4   ;;  %s1893_s9 = smov %s1373_s10 }
 0x1ce   : > { %s1894_s10 = smov %s1377_s11  ;;  %s1895_s11 = smov %s1442_s18 }
 0x1cf   : > { %s1896_s12 = smov %s1431_s15  ;;  %15 = sbr.rel (!%p13_p13) target bundleno = 4 (0x4), region = 68 }
 0x1d4   :  { %853 = vsyncpa [#allocation3], 1 }
 0x1d5   :  { %855 = vsyncpa [#allocation3 + $0x1], 1 }
 0x1d6   :  { %856 = vsyncpa [#allocation4], 1 }
 0x1d7   :  { %858 = vsyncpa [#allocation4 + $0x1], 1 }

</bundles_post_ra>
